<compile_context>
chip_gen: v7x
topology: tpu7x:2x2x1
jax: 0.10.0
libtpu: 0.0.40
codegen_flags: <defaults>
</compile_context>

<pallas_src>
import jax
import jax.numpy as jnp
from jax.experimental import pallas as pl
from jax.experimental.pallas import tpu as pltpu


def lstm_fc_kernel(x_ref, wx_ref, wh_ref, b_ref, wfc_ref, bfc_ref, out_ref):
    """Single invocation; the whole problem is resident in VMEM.

    x_ref   : (T*B, D)  time-major input; rows [t*B:(t+1)*B] are timestep t
    wx_ref  : (D, 4H)   input->gate weights, gate column order (i, f, o, g)
    wh_ref  : (H, 4H)   hidden->gate weights, same column order
    b_ref   : (1, 4H)   b_ih + b_hh, same column order
    wfc_ref : (1, H)    final Linear weight row
    bfc_ref : (1, 1)    final Linear bias
    out_ref : (B, 1)
    """
    TB, _ = x_ref.shape
    H = wh_ref.shape[0]
    B = out_ref.shape[0]
    T = TB // B

    # Hoisted input projection for ALL timesteps in one MXU matmul, bias folded.
    # (T*B, 4H) f32 stays in vregs at these shapes (4 vregs for the demo size).
    xproj = jnp.dot(x_ref[...], wx_ref[...],
                    preferred_element_type=jnp.float32) + b_ref[...]

    # Recurrent weights resident across the whole unrolled loop.
    wh = wh_ref[...]                                        # (H, 4H)

    h = jnp.zeros((B, H), jnp.float32)
    c = jnp.zeros((B, H), jnp.float32)

    # Static, fully-unrolled time loop (T is tiny): every slice below is static.
    for t in range(T):
        gates = xproj[t * B:(t + 1) * B, :] + jnp.dot(
            h, wh, preferred_element_type=jnp.float32)      # (B, 4H)
        # Gate order (i, f, o, g): one sigmoid over 3H lanes + one tanh over H.
        sig = jax.nn.sigmoid(gates[:, 0:3 * H])
        g_g = jnp.tanh(gates[:, 3 * H:4 * H])
        i_g = sig[:, 0:H]
        f_g = sig[:, H:2 * H]
        o_g = sig[:, 2 * H:3 * H]
        c = f_g * c + i_g * g_g
        h = o_g * jnp.tanh(c)

    # Final FC (H -> 1) on VPU (mul) + XLU (lane reduce); avoids an N=1 MXU matmul.
    out_ref[...] = (jnp.sum(h * wfc_ref[...], axis=-1, keepdims=True)
                    + bfc_ref[...])


def _reorder_ifog(w):
    """PyTorch stacks gates as (i, f, g, o) along axis 0; reorder to (i, f, o, g)."""
    i, f, g, o = jnp.split(w, 4, axis=0)
    return jnp.concatenate([i, f, o, g], axis=0)


def lstm_model_forward(x, w_ih, w_hh, b_ih, b_hh, w_fc, b_fc):
    """x: (B, T, D) f32 (batch_first, matches PyTorch).  PyTorch-convention
    weights: w_ih (4H, D), w_hh (4H, H), b_ih (4H,), b_hh (4H,), w_fc (1, H),
    b_fc (1,).  Returns (B, 1) = Linear(lstm(x)[:, -1])."""
    B, T, D = x.shape
    H = w_hh.shape[1]

    # One-time wrapper layout plumbing: time-major input, gate-reordered and
    # transposed weights, folded bias.  No pre-broadcasting to B.
    x2d = jnp.transpose(jnp.asarray(x, jnp.float32), (1, 0, 2)).reshape(T * B, D)
    wx = _reorder_ifog(jnp.asarray(w_ih, jnp.float32)).T            # (D, 4H)
    wh = _reorder_ifog(jnp.asarray(w_hh, jnp.float32)).T            # (H, 4H)
    b_all = jnp.asarray(b_ih, jnp.float32) + jnp.asarray(b_hh, jnp.float32)
    b = _reorder_ifog(b_all).reshape(1, 4 * H)                      # (1, 4H)
    wfc = jnp.asarray(w_fc, jnp.float32).reshape(1, H)              # (1, H)
    bfc = jnp.asarray(b_fc, jnp.float32).reshape(1, 1)              # (1, 1)

    # Single invocation, no grid, no pipelining: full-extent VMEM blocks.
    in_specs = [pl.BlockSpec(memory_space=pltpu.MemorySpace.VMEM)
                for _ in range(6)]
    out_specs = pl.BlockSpec(memory_space=pltpu.MemorySpace.VMEM)

    return pl.pallas_call(
        lstm_fc_kernel,
        out_shape=jax.ShapeDtypeStruct((B, 1), jnp.float32),
        in_specs=in_specs,
        out_specs=out_specs,
    )(x2d, wx, wh, b, wfc, bfc)


def lstm_model_reference(x, w_ih, w_hh, b_ih, b_hh, w_fc, b_fc):
    """Pure-JAX reference matching torch.nn.LSTM + Linear semantics."""
    B, T, D = x.shape
    H = w_hh.shape[1]
    h = jnp.zeros((B, H), jnp.float32)
    c = jnp.zeros((B, H), jnp.float32)

    def step(carry, x_t):
        h, c = carry
        gates = x_t @ w_ih.T + h @ w_hh.T + b_ih + b_hh
        i = jax.nn.sigmoid(gates[:, 0 * H:1 * H])
        f = jax.nn.sigmoid(gates[:, 1 * H:2 * H])
        g = jnp.tanh(gates[:, 2 * H:3 * H])
        o = jax.nn.sigmoid(gates[:, 3 * H:4 * H])
        c = f * c + i * g
        h = o * jnp.tanh(c)
        return (h, c), None

    (h, c), _ = jax.lax.scan(step, (h, c), jnp.swapaxes(x, 0, 1))
    return h @ w_fc.T + b_fc


if __name__ == "__main__":
    B, T, D, H = 2, 8, 32, 64
    key = jax.random.PRNGKey(0)
    kx, k1, k2, k3, k4, k5, k6 = jax.random.split(key, 7)

    # Deterministic "PyTorch-style" uniform(-1/sqrt(H), 1/sqrt(H)) init.
    s = 1.0 / jnp.sqrt(jnp.float32(H))
    x = jax.random.normal(kx, (B, T, D), jnp.float32)
    w_ih = jax.random.uniform(k1, (4 * H, D), jnp.float32, -s, s)
    w_hh = jax.random.uniform(k2, (4 * H, H), jnp.float32, -s, s)
    b_ih = jax.random.uniform(k3, (4 * H,), jnp.float32, -s, s)
    b_hh = jax.random.uniform(k4, (4 * H,), jnp.float32, -s, s)
    w_fc = jax.random.uniform(k5, (1, H), jnp.float32, -s, s)
    b_fc = jax.random.uniform(k6, (1,), jnp.float32, -s, s)

    out = jax.block_until_ready(
        lstm_model_forward(x, w_ih, w_hh, b_ih, b_hh, w_fc, b_fc))

    # Pin reference matmul precision so the f32 comparison cannot flake.
    with jax.default_matmul_precision("highest"):
        ref = jax.block_until_ready(
            lstm_model_reference(x, w_ih, w_hh, b_ih, b_hh, w_fc, b_fc))

    assert out.shape == (B, 1), out.shape
    assert jnp.allclose(out, ref, atol=1e-4, rtol=1e-4), (out, ref)
    print("KERNEL_OK")
</pallas_src>

<mosaic_0001>
module attributes {stable_mosaic.version = 11 : i64} {
  func.func @lstm_fc_kernel(%arg0: memref<16x32xf32, #tpu.memory_space<vmem>>, %arg1: memref<32x256xf32, #tpu.memory_space<vmem>>, %arg2: memref<64x256xf32, #tpu.memory_space<vmem>>, %arg3: memref<1x256xf32, #tpu.memory_space<vmem>>, %arg4: memref<1x64xf32, #tpu.memory_space<vmem>>, %arg5: memref<1x1xf32, #tpu.memory_space<vmem>>, %arg6: memref<2x1xf32, #tpu.memory_space<vmem>>) attributes {dimension_semantics = [], scalar_prefetch = 0 : i64, scratch_operands = 0 : i64, tpu.core_type = #tpu.core_type<tc>} {
    %c0 = arith.constant 0 : index
    %c0_0 = arith.constant 0 : index
    %0 = vector.load %arg0[%c0, %c0_0] : memref<16x32xf32, #tpu.memory_space<vmem>>, vector<16x32xf32>
    %c0_1 = arith.constant 0 : index
    %c0_2 = arith.constant 0 : index
    %1 = vector.load %arg1[%c0_1, %c0_2] : memref<32x256xf32, #tpu.memory_space<vmem>>, vector<32x256xf32>
    %cst = arith.constant dense<0.000000e+00> : vector<16x256xf32>
    %2 = tpu.matmul %0, %1, %cst {dimension_numbers = #tpu.dot_dimension_numbers<[1], [0], [0], [1], [0, 0, 1, 1], [], []>} : vector<16x32xf32>, vector<32x256xf32>, vector<16x256xf32> -> vector<16x256xf32>
    %c0_3 = arith.constant 0 : index
    %c0_4 = arith.constant 0 : index
    %3 = vector.load %arg3[%c0_3, %c0_4] : memref<1x256xf32, #tpu.memory_space<vmem>>, vector<1x256xf32>
    %4 = vector.broadcast %3 : vector<1x256xf32> to vector<16x256xf32>
    %5 = arith.addf %2, %4 : vector<16x256xf32>
    %c0_5 = arith.constant 0 : index
    %c0_6 = arith.constant 0 : index
    %6 = vector.load %arg2[%c0_5, %c0_6] : memref<64x256xf32, #tpu.memory_space<vmem>>, vector<64x256xf32>
    %cst_7 = arith.constant 0.000000e+00 : f32
    %7 = vector.broadcast %cst_7 : f32 to vector<2x64xf32>
    %cst_8 = arith.constant 0.000000e+00 : f32
    %8 = vector.broadcast %cst_8 : f32 to vector<2x64xf32>
    %9 = vector.extract_strided_slice %5 {offsets = [0, 0], sizes = [2, 256], strides = [1, 1]} : vector<16x256xf32> to vector<2x256xf32>
    %cst_9 = arith.constant dense<0.000000e+00> : vector<2x256xf32>
    %10 = tpu.matmul %7, %6, %cst_9 {dimension_numbers = #tpu.dot_dimension_numbers<[1], [0], [0], [1], [0, 0, 1, 1], [], []>} : vector<2x64xf32>, vector<64x256xf32>, vector<2x256xf32> -> vector<2x256xf32>
    %11 = arith.addf %9, %10 : vector<2x256xf32>
    %12 = vector.extract_strided_slice %11 {offsets = [0, 0], sizes = [2, 192], strides = [1, 1]} : vector<2x256xf32> to vector<2x192xf32>
    %13 = arith.negf %12 : vector<2x192xf32>
    %14 = math.exp %13 : vector<2x192xf32>
    %cst_10 = arith.constant 1.000000e+00 : f32
    %15 = vector.broadcast %cst_10 : f32 to vector<2x192xf32>
    %16 = arith.addf %15, %14 : vector<2x192xf32>
    %17 = arith.divf %15, %16 : vector<2x192xf32>
    %18 = vector.extract_strided_slice %11 {offsets = [0, 192], sizes = [2, 64], strides = [1, 1]} : vector<2x256xf32> to vector<2x64xf32>
    %19 = math.tanh %18 : vector<2x64xf32>
    %20 = vector.extract_strided_slice %17 {offsets = [0, 0], sizes = [2, 64], strides = [1, 1]} : vector<2x192xf32> to vector<2x64xf32>
    %21 = vector.extract_strided_slice %17 {offsets = [0, 64], sizes = [2, 64], strides = [1, 1]} : vector<2x192xf32> to vector<2x64xf32>
    %22 = vector.extract_strided_slice %17 {offsets = [0, 128], sizes = [2, 64], strides = [1, 1]} : vector<2x192xf32> to vector<2x64xf32>
    %23 = arith.mulf %21, %8 : vector<2x64xf32>
    %24 = arith.mulf %20, %19 : vector<2x64xf32>
    %25 = arith.addf %23, %24 : vector<2x64xf32>
    %26 = math.tanh %25 : vector<2x64xf32>
    %27 = arith.mulf %22, %26 : vector<2x64xf32>
    %28 = vector.extract_strided_slice %5 {offsets = [2, 0], sizes = [2, 256], strides = [1, 1]} : vector<16x256xf32> to vector<2x256xf32>
    %cst_11 = arith.constant dense<0.000000e+00> : vector<2x256xf32>
    %29 = tpu.matmul %27, %6, %cst_11 {dimension_numbers = #tpu.dot_dimension_numbers<[1], [0], [0], [1], [0, 0, 1, 1], [], []>} : vector<2x64xf32>, vector<64x256xf32>, vector<2x256xf32> -> vector<2x256xf32>
    %30 = arith.addf %28, %29 : vector<2x256xf32>
    %31 = vector.extract_strided_slice %30 {offsets = [0, 0], sizes = [2, 192], strides = [1, 1]} : vector<2x256xf32> to vector<2x192xf32>
    %32 = arith.negf %31 : vector<2x192xf32>
    %33 = math.exp %32 : vector<2x192xf32>
    %cst_12 = arith.constant 1.000000e+00 : f32
    %34 = vector.broadcast %cst_12 : f32 to vector<2x192xf32>
    %35 = arith.addf %34, %33 : vector<2x192xf32>
    %36 = arith.divf %34, %35 : vector<2x192xf32>
    %37 = vector.extract_strided_slice %30 {offsets = [0, 192], sizes = [2, 64], strides = [1, 1]} : vector<2x256xf32> to vector<2x64xf32>
    %38 = math.tanh %37 : vector<2x64xf32>
    %39 = vector.extract_strided_slice %36 {offsets = [0, 0], sizes = [2, 64], strides = [1, 1]} : vector<2x192xf32> to vector<2x64xf32>
    %40 = vector.extract_strided_slice %36 {offsets = [0, 64], sizes = [2, 64], strides = [1, 1]} : vector<2x192xf32> to vector<2x64xf32>
    %41 = vector.extract_strided_slice %36 {offsets = [0, 128], sizes = [2, 64], strides = [1, 1]} : vector<2x192xf32> to vector<2x64xf32>
    %42 = arith.mulf %40, %25 : vector<2x64xf32>
    %43 = arith.mulf %39, %38 : vector<2x64xf32>
    %44 = arith.addf %42, %43 : vector<2x64xf32>
    %45 = math.tanh %44 : vector<2x64xf32>
    %46 = arith.mulf %41, %45 : vector<2x64xf32>
    %47 = vector.extract_strided_slice %5 {offsets = [4, 0], sizes = [2, 256], strides = [1, 1]} : vector<16x256xf32> to vector<2x256xf32>
    %cst_13 = arith.constant dense<0.000000e+00> : vector<2x256xf32>
    %48 = tpu.matmul %46, %6, %cst_13 {dimension_numbers = #tpu.dot_dimension_numbers<[1], [0], [0], [1], [0, 0, 1, 1], [], []>} : vector<2x64xf32>, vector<64x256xf32>, vector<2x256xf32> -> vector<2x256xf32>
    %49 = arith.addf %47, %48 : vector<2x256xf32>
    %50 = vector.extract_strided_slice %49 {offsets = [0, 0], sizes = [2, 192], strides = [1, 1]} : vector<2x256xf32> to vector<2x192xf32>
    %51 = arith.negf %50 : vector<2x192xf32>
    %52 = math.exp %51 : vector<2x192xf32>
    %cst_14 = arith.constant 1.000000e+00 : f32
    %53 = vector.broadcast %cst_14 : f32 to vector<2x192xf32>
    %54 = arith.addf %53, %52 : vector<2x192xf32>
    %55 = arith.divf %53, %54 : vector<2x192xf32>
    %56 = vector.extract_strided_slice %49 {offsets = [0, 192], sizes = [2, 64], strides = [1, 1]} : vector<2x256xf32> to vector<2x64xf32>
    %57 = math.tanh %56 : vector<2x64xf32>
    %58 = vector.extract_strided_slice %55 {offsets = [0, 0], sizes = [2, 64], strides = [1, 1]} : vector<2x192xf32> to vector<2x64xf32>
    %59 = vector.extract_strided_slice %55 {offsets = [0, 64], sizes = [2, 64], strides = [1, 1]} : vector<2x192xf32> to vector<2x64xf32>
    %60 = vector.extract_strided_slice %55 {offsets = [0, 128], sizes = [2, 64], strides = [1, 1]} : vector<2x192xf32> to vector<2x64xf32>
    %61 = arith.mulf %59, %44 : vector<2x64xf32>
    %62 = arith.mulf %58, %57 : vector<2x64xf32>
    %63 = arith.addf %61, %62 : vector<2x64xf32>
    %64 = math.tanh %63 : vector<2x64xf32>
    %65 = arith.mulf %60, %64 : vector<2x64xf32>
    %66 = vector.extract_strided_slice %5 {offsets = [6, 0], sizes = [2, 256], strides = [1, 1]} : vector<16x256xf32> to vector<2x256xf32>
    %cst_15 = arith.constant dense<0.000000e+00> : vector<2x256xf32>
    %67 = tpu.matmul %65, %6, %cst_15 {dimension_numbers = #tpu.dot_dimension_numbers<[1], [0], [0], [1], [0, 0, 1, 1], [], []>} : vector<2x64xf32>, vector<64x256xf32>, vector<2x256xf32> -> vector<2x256xf32>
    %68 = arith.addf %66, %67 : vector<2x256xf32>
    %69 = vector.extract_strided_slice %68 {offsets = [0, 0], sizes = [2, 192], strides = [1, 1]} : vector<2x256xf32> to vector<2x192xf32>
    %70 = arith.negf %69 : vector<2x192xf32>
    %71 = math.exp %70 : vector<2x192xf32>
    %cst_16 = arith.constant 1.000000e+00 : f32
    %72 = vector.broadcast %cst_16 : f32 to vector<2x192xf32>
    %73 = arith.addf %72, %71 : vector<2x192xf32>
    %74 = arith.divf %72, %73 : vector<2x192xf32>
    %75 = vector.extract_strided_slice %68 {offsets = [0, 192], sizes = [2, 64], strides = [1, 1]} : vector<2x256xf32> to vector<2x64xf32>
    %76 = math.tanh %75 : vector<2x64xf32>
    %77 = vector.extract_strided_slice %74 {offsets = [0, 0], sizes = [2, 64], strides = [1, 1]} : vector<2x192xf32> to vector<2x64xf32>
    %78 = vector.extract_strided_slice %74 {offsets = [0, 64], sizes = [2, 64], strides = [1, 1]} : vector<2x192xf32> to vector<2x64xf32>
    %79 = vector.extract_strided_slice %74 {offsets = [0, 128], sizes = [2, 64], strides = [1, 1]} : vector<2x192xf32> to vector<2x64xf32>
    %80 = arith.mulf %78, %63 : vector<2x64xf32>
    %81 = arith.mulf %77, %76 : vector<2x64xf32>
    %82 = arith.addf %80, %81 : vector<2x64xf32>
    %83 = math.tanh %82 : vector<2x64xf32>
    %84 = arith.mulf %79, %83 : vector<2x64xf32>
    %85 = vector.extract_strided_slice %5 {offsets = [8, 0], sizes = [2, 256], strides = [1, 1]} : vector<16x256xf32> to vector<2x256xf32>
    %cst_17 = arith.constant dense<0.000000e+00> : vector<2x256xf32>
    %86 = tpu.matmul %84, %6, %cst_17 {dimension_numbers = #tpu.dot_dimension_numbers<[1], [0], [0], [1], [0, 0, 1, 1], [], []>} : vector<2x64xf32>, vector<64x256xf32>, vector<2x256xf32> -> vector<2x256xf32>
    %87 = arith.addf %85, %86 : vector<2x256xf32>
    %88 = vector.extract_strided_slice %87 {offsets = [0, 0], sizes = [2, 192], strides = [1, 1]} : vector<2x256xf32> to vector<2x192xf32>
    %89 = arith.negf %88 : vector<2x192xf32>
    %90 = math.exp %89 : vector<2x192xf32>
    %cst_18 = arith.constant 1.000000e+00 : f32
    %91 = vector.broadcast %cst_18 : f32 to vector<2x192xf32>
    %92 = arith.addf %91, %90 : vector<2x192xf32>
    %93 = arith.divf %91, %92 : vector<2x192xf32>
    %94 = vector.extract_strided_slice %87 {offsets = [0, 192], sizes = [2, 64], strides = [1, 1]} : vector<2x256xf32> to vector<2x64xf32>
    %95 = math.tanh %94 : vector<2x64xf32>
    %96 = vector.extract_strided_slice %93 {offsets = [0, 0], sizes = [2, 64], strides = [1, 1]} : vector<2x192xf32> to vector<2x64xf32>
    %97 = vector.extract_strided_slice %93 {offsets = [0, 64], sizes = [2, 64], strides = [1, 1]} : vector<2x192xf32> to vector<2x64xf32>
    %98 = vector.extract_strided_slice %93 {offsets = [0, 128], sizes = [2, 64], strides = [1, 1]} : vector<2x192xf32> to vector<2x64xf32>
    %99 = arith.mulf %97, %82 : vector<2x64xf32>
    %100 = arith.mulf %96, %95 : vector<2x64xf32>
    %101 = arith.addf %99, %100 : vector<2x64xf32>
    %102 = math.tanh %101 : vector<2x64xf32>
    %103 = arith.mulf %98, %102 : vector<2x64xf32>
    %104 = vector.extract_strided_slice %5 {offsets = [10, 0], sizes = [2, 256], strides = [1, 1]} : vector<16x256xf32> to vector<2x256xf32>
    %cst_19 = arith.constant dense<0.000000e+00> : vector<2x256xf32>
    %105 = tpu.matmul %103, %6, %cst_19 {dimension_numbers = #tpu.dot_dimension_numbers<[1], [0], [0], [1], [0, 0, 1, 1], [], []>} : vector<2x64xf32>, vector<64x256xf32>, vector<2x256xf32> -> vector<2x256xf32>
    %106 = arith.addf %104, %105 : vector<2x256xf32>
    %107 = vector.extract_strided_slice %106 {offsets = [0, 0], sizes = [2, 192], strides = [1, 1]} : vector<2x256xf32> to vector<2x192xf32>
    %108 = arith.negf %107 : vector<2x192xf32>
    %109 = math.exp %108 : vector<2x192xf32>
    %cst_20 = arith.constant 1.000000e+00 : f32
    %110 = vector.broadcast %cst_20 : f32 to vector<2x192xf32>
    %111 = arith.addf %110, %109 : vector<2x192xf32>
    %112 = arith.divf %110, %111 : vector<2x192xf32>
    %113 = vector.extract_strided_slice %106 {offsets = [0, 192], sizes = [2, 64], strides = [1, 1]} : vector<2x256xf32> to vector<2x64xf32>
    %114 = math.tanh %113 : vector<2x64xf32>
    %115 = vector.extract_strided_slice %112 {offsets = [0, 0], sizes = [2, 64], strides = [1, 1]} : vector<2x192xf32> to vector<2x64xf32>
    %116 = vector.extract_strided_slice %112 {offsets = [0, 64], sizes = [2, 64], strides = [1, 1]} : vector<2x192xf32> to vector<2x64xf32>
    %117 = vector.extract_strided_slice %112 {offsets = [0, 128], sizes = [2, 64], strides = [1, 1]} : vector<2x192xf32> to vector<2x64xf32>
    %118 = arith.mulf %116, %101 : vector<2x64xf32>
    %119 = arith.mulf %115, %114 : vector<2x64xf32>
    %120 = arith.addf %118, %119 : vector<2x64xf32>
    %121 = math.tanh %120 : vector<2x64xf32>
    %122 = arith.mulf %117, %121 : vector<2x64xf32>
    %123 = vector.extract_strided_slice %5 {offsets = [12, 0], sizes = [2, 256], strides = [1, 1]} : vector<16x256xf32> to vector<2x256xf32>
    %cst_21 = arith.constant dense<0.000000e+00> : vector<2x256xf32>
    %124 = tpu.matmul %122, %6, %cst_21 {dimension_numbers = #tpu.dot_dimension_numbers<[1], [0], [0], [1], [0, 0, 1, 1], [], []>} : vector<2x64xf32>, vector<64x256xf32>, vector<2x256xf32> -> vector<2x256xf32>
    %125 = arith.addf %123, %124 : vector<2x256xf32>
    %126 = vector.extract_strided_slice %125 {offsets = [0, 0], sizes = [2, 192], strides = [1, 1]} : vector<2x256xf32> to vector<2x192xf32>
    %127 = arith.negf %126 : vector<2x192xf32>
    %128 = math.exp %127 : vector<2x192xf32>
    %cst_22 = arith.constant 1.000000e+00 : f32
    %129 = vector.broadcast %cst_22 : f32 to vector<2x192xf32>
    %130 = arith.addf %129, %128 : vector<2x192xf32>
    %131 = arith.divf %129, %130 : vector<2x192xf32>
    %132 = vector.extract_strided_slice %125 {offsets = [0, 192], sizes = [2, 64], strides = [1, 1]} : vector<2x256xf32> to vector<2x64xf32>
    %133 = math.tanh %132 : vector<2x64xf32>
    %134 = vector.extract_strided_slice %131 {offsets = [0, 0], sizes = [2, 64], strides = [1, 1]} : vector<2x192xf32> to vector<2x64xf32>
    %135 = vector.extract_strided_slice %131 {offsets = [0, 64], sizes = [2, 64], strides = [1, 1]} : vector<2x192xf32> to vector<2x64xf32>
    %136 = vector.extract_strided_slice %131 {offsets = [0, 128], sizes = [2, 64], strides = [1, 1]} : vector<2x192xf32> to vector<2x64xf32>
    %137 = arith.mulf %135, %120 : vector<2x64xf32>
    %138 = arith.mulf %134, %133 : vector<2x64xf32>
    %139 = arith.addf %137, %138 : vector<2x64xf32>
    %140 = math.tanh %139 : vector<2x64xf32>
    %141 = arith.mulf %136, %140 : vector<2x64xf32>
    %142 = vector.extract_strided_slice %5 {offsets = [14, 0], sizes = [2, 256], strides = [1, 1]} : vector<16x256xf32> to vector<2x256xf32>
    %cst_23 = arith.constant dense<0.000000e+00> : vector<2x256xf32>
    %143 = tpu.matmul %141, %6, %cst_23 {dimension_numbers = #tpu.dot_dimension_numbers<[1], [0], [0], [1], [0, 0, 1, 1], [], []>} : vector<2x64xf32>, vector<64x256xf32>, vector<2x256xf32> -> vector<2x256xf32>
    %144 = arith.addf %142, %143 : vector<2x256xf32>
    %145 = vector.extract_strided_slice %144 {offsets = [0, 0], sizes = [2, 192], strides = [1, 1]} : vector<2x256xf32> to vector<2x192xf32>
    %146 = arith.negf %145 : vector<2x192xf32>
    %147 = math.exp %146 : vector<2x192xf32>
    %cst_24 = arith.constant 1.000000e+00 : f32
    %148 = vector.broadcast %cst_24 : f32 to vector<2x192xf32>
    %149 = arith.addf %148, %147 : vector<2x192xf32>
    %150 = arith.divf %148, %149 : vector<2x192xf32>
    %151 = vector.extract_strided_slice %144 {offsets = [0, 192], sizes = [2, 64], strides = [1, 1]} : vector<2x256xf32> to vector<2x64xf32>
    %152 = math.tanh %151 : vector<2x64xf32>
    %153 = vector.extract_strided_slice %150 {offsets = [0, 0], sizes = [2, 64], strides = [1, 1]} : vector<2x192xf32> to vector<2x64xf32>
    %154 = vector.extract_strided_slice %150 {offsets = [0, 64], sizes = [2, 64], strides = [1, 1]} : vector<2x192xf32> to vector<2x64xf32>
    %155 = vector.extract_strided_slice %150 {offsets = [0, 128], sizes = [2, 64], strides = [1, 1]} : vector<2x192xf32> to vector<2x64xf32>
    %156 = arith.mulf %154, %139 : vector<2x64xf32>
    %157 = arith.mulf %153, %152 : vector<2x64xf32>
    %158 = arith.addf %156, %157 : vector<2x64xf32>
    %159 = math.tanh %158 : vector<2x64xf32>
    %160 = arith.mulf %155, %159 : vector<2x64xf32>
    %c0_25 = arith.constant 0 : index
    %c0_26 = arith.constant 0 : index
    %161 = vector.load %arg4[%c0_25, %c0_26] : memref<1x64xf32, #tpu.memory_space<vmem>>, vector<1x64xf32>
    %162 = vector.broadcast %161 : vector<1x64xf32> to vector<2x64xf32>
    %163 = arith.mulf %160, %162 : vector<2x64xf32>
    %cst_27 = arith.constant dense<0.000000e+00> : vector<2xf32>
    %164 = vector.multi_reduction <add>, %163, %cst_27 [1] : vector<2x64xf32> to vector<2xf32>
    %165 = vector.shape_cast %164 : vector<2xf32> to vector<2x1xf32>
    %c0_28 = arith.constant 0 : index
    %c0_29 = arith.constant 0 : index
    %166 = vector.load %arg5[%c0_28, %c0_29] : memref<1x1xf32, #tpu.memory_space<vmem>>, vector<1x1xf32>
    %167 = vector.broadcast %166 : vector<1x1xf32> to vector<2x1xf32>
    %168 = arith.addf %165, %167 : vector<2x1xf32>
    %c0_30 = arith.constant 0 : index
    %c0_31 = arith.constant 0 : index
    %169 = vector.load %arg6[%c0_30, %c0_31] : memref<2x1xf32, #tpu.memory_space<vmem>>, vector<2x1xf32>
    tpu.vector_store %arg6[%c0_30, %c0_31], %168 {strides = array<i32>} : memref<2x1xf32, #tpu.memory_space<vmem>>, vector<2x1xf32>,
    return
  }
}

</mosaic_0001>

<bundles_post_ra>
// kernel: tpu_custom_call.1
= control target key start
LH: loop header
LB: loop body
LE: loop exit
PB: predicated region body
PF: predicated region fallthrough
CT: control target
= control target key end

     0   :  { %s1725_s0 = inlined_call_operand.hbm [shape: f32[16,32], index: 0, kind: input, shape index: {}]   ;;  %s1726_s1 = inlined_call_operand.hbm [shape: f32[32,256], index: 1, kind: input, shape index: {}]   ;;  %s1727_s2 = inlined_call_operand.hbm [shape: f32[64,256], index: 2, kind: input, shape index: {}]   ;;  %s1728_s3 = inlined_call_operand.vmem [shape: f32[1,256], index: 3, kind: input, shape index: {}]   ;;  %s1729_s4 = inlined_call_operand.vmem [shape: f32[1,64], index: 4, kind: input, shape index: {}]   ;;  %s1730_s5 = inlined_call_operand.<no memory space> [shape: f32[1,1], index: 5, kind: input, shape index: {}]   ;;  %s1731_s6 = inlined_call_operand.vmem [shape: f32[2,1], index: 6, kind: output, shape index: {}]  }
   0x1   :  { %v11_v0 = vstv %s1730_s5 }
   0x2   :  { %12 = vst [vmem:[#allocation2] sm:$0x1] %v11_v0 }
   0x3   :  { %13 = vsyncpa [#allocation4], 0 }
   0x4   :  { %14 = vsyncpa [#allocation6], 0  ;;  %s1465_s23 = smov [#allocation5]   ;;  %s1395_s27 = scalar_lea.hbm %s1726_s1, 1024 }
   0x5   :  { %s32_s24 = sshll.u32 %s1465_s23, 4  ;;  %p1396_p0 = scmp.ne.s32.totalorder %s1726_s1, %s1395_s27  ;;  %s33_s24 = int_to_ptr.vmem [resolvable:$true] %s32_s24 }
   0x6   :  { %p1399_p1 = scmp.lt.u32.totalorder %s1395_s27, %s1726_s1 }
   0x8   :  { %p1401_p2 = pnand %p1399_p1, %p1396_p0 }
   0xa   :  { %1404 = shalt.err (!%p1401_p2)
}
   0xb   :  { %s1405_s5 = scalar_lea.vmem %s33_s24, 1024  ;;  %p1410_p4 = scmp.lt.s32.totalorder %s33_s24, %s33_s24 }
   0xc   :  { %p1406_p3 = scmp.ne.s32.totalorder %s33_s24, %s1405_s5  ;;  %p1411_p5 = scmp.lt.s32.totalorder %s1405_s5, %s1405_s5 }
   0xe   :  { %p1412_p6 = por %p1411_p5, %p1410_p4 }
  0x10   :  { %p1413_p7 = pnand %p1412_p6, %p1406_p3 }
  0x12   :  { %1416 = shalt.err (!%p1413_p7)
}
  0x13   :  { %s1466_s8 = smov 256   ;;  %s1467_s9 = smov 16  }
  0x14   :  { %38 = dma.hbm_to_vmem [thread:$0]  %s1726_s1, 1024, %s33_s24, [#allocation6], %s1466_s8, %s1466_s8, %s1467_s9  }
  0x15   :  { %s1468_s12 = smov [#allocation3]   ;;  %s1417_s16 = scalar_lea.hbm %s1725_s0, 256 }
  0x16   :  { %s20_s13 = sshll.u32 %s1468_s12, 4  ;;  %p1418_p8 = scmp.ne.s32.totalorder %s1725_s0, %s1417_s16  ;;  %s21_s13 = int_to_ptr.vmem [resolvable:$true] %s20_s13 }
  0x17   :  { %p1421_p9 = scmp.lt.u32.totalorder %s1417_s16, %s1725_s0 }
  0x19   :  { %p1423_p10 = pnand %p1421_p9, %p1418_p8 }
  0x1b   :  { %1426 = shalt.err (!%p1423_p10)
}
  0x1c   :  { %s1427_s21 = scalar_lea.vmem %s21_s13, 256  ;;  %p1432_p12 = scmp.lt.s32.totalorder %s21_s13, %s21_s13 }
  0x1d   :  { %p1428_p11 = scmp.ne.s32.totalorder %s21_s13, %s1427_s21  ;;  %p1433_p13 = scmp.lt.s32.totalorder %s1427_s21, %s1427_s21 }
  0x1f   :  { %p1434_p0 = por %p1433_p13, %p1432_p12 }
  0x21   :  { %p1435_p1 = pnand %p1434_p0, %p1428_p11 }
  0x23   :  { %1438 = shalt.err (!%p1435_p1)
}
  0x24   :  { %s1469_s1 = smov 128   ;;  %s1470_s22 = smov 8  }
  0x25   :  { %26 = dma.hbm_to_vmem [thread:$0]  %s1725_s0, 256, %s21_s13, [#allocation4], %s1469_s1, %s1469_s1, %s1470_s22  }
  0x26   :  { %s1471_s25 = smov [#allocation7]   ;;  %s1439_s29 = scalar_lea.hbm %s1727_s2, 2048 }
  0x27   :  { %s44_s26 = sshll.u32 %s1471_s25, 4  ;;  %p1440_p2 = scmp.ne.s32.totalorder %s1727_s2, %s1439_s29  ;;  %s45_s26 = int_to_ptr.vmem [resolvable:$true] %s44_s26 }
  0x28   :  { %p1443_p3 = scmp.lt.u32.totalorder %s1439_s29, %s1727_s2 }
  0x2a   :  { %p1445_p4 = pnand %p1443_p3, %p1440_p2 }
  0x2c   :  { %1448 = shalt.err (!%p1445_p4)
}
  0x2d   :  { %s1449_s11 = scalar_lea.vmem %s45_s26, 2048  ;;  %p1454_p6 = scmp.lt.s32.totalorder %s45_s26, %s45_s26 }
  0x2e   :  { %p1450_p5 = scmp.ne.s32.totalorder %s45_s26, %s1449_s11  ;;  %p1455_p7 = scmp.lt.s32.totalorder %s1449_s11, %s1449_s11 }
  0x30   :  { %p1456_p8 = por %p1455_p7, %p1454_p6 }
  0x32   :  { %p1457_p9 = pnand %p1456_p8, %p1450_p5 }
  0x34   :  { %1460 = shalt.err (!%p1457_p9)
}
  0x35   :  { %50 = dma.hbm_to_vmem [thread:$0]  %s1727_s2, 2048, %s45_s26, [#allocation6], %s1466_s8, %s1466_s8, %s1467_s9  }
  0x36   :  { %1461 = dma.done.wait [#allocation4], 256  }
  0x37   :  { %1462 = vsyncadd [#allocation4], 4294967040 }
  0x38   :  { %1463 = dma.done.wait [#allocation6], 3072  }
  0x39   :  { %1464 = vsyncadd [#allocation6], 4294964224  ;;  %v1472_v1 = vmov 0.0   ;;  %v173_v2 = vld [vmem:[#allocation7 + $0x8] sm:$0xff]  ;;  %v175_v3 = vld [vmem:[#allocation7 + $0x18] sm:$0xff]  ;;  %vm88_vm0 = vcmask 261120   ;;  %v78_v39 = vlaneseq }
  0x3a   :  { %159 = vmatprep.mubr.f32.mxu0 %v1472_v1  ;;  %256 = vmatprep.mubr.f32.mxu1 %v1472_v1  ;;  %v172_v4 = vld [vmem:[#allocation7] sm:$0xff]  ;;  %v1556_v5 = vpack.c.bf16 %v175_v3, %v173_v2  ;;  %v174_v6 = vld [vmem:[#allocation7 + $0x10] sm:$0xff]  ;;  %v177_v7 = vld [vmem:[#allocation7 + $0x28] sm:$0xff]  ;;  %s1473_s9 = smov 64   ;;  %vm188_vm1 = vcmask 523264   ;;  %vm1107_vm2 = vcmask 523270  }
  0x3b   :  { %v179_v8 = vld [vmem:[#allocation7 + $0x38] sm:$0xff]  ;;  %v1558_v9 = vpack.c.bf16 %v174_v6, %v172_v4  ;;  %v69_v11 = vld [vmem:[#allocation5 + $0x8] sm:$0xff]  ;;  %v176_v13 = vld [vmem:[#allocation7 + $0x20] sm:$0xff]  ;;  %v79_v40 = vshrl.u32 %v78_v39, 7  ;;  %vm1119_vm3 = vcmask 7174  }
  0x3c   :  { %v1560_v10 = vpack.c.bf16 %v179_v8, %v177_v7  ;;  %v71_v12 = vld [vmem:[#allocation5 + $0x18] sm:$0xff]  ;;  %1163 = vmatprep.subr.bf16.mxu1 %v1556_v5  ;;  %v178_v15 = vld [vmem:[#allocation7 + $0x30] sm:$0xff]  ;;  %v68_v16 = vld [vmem:[#allocation5] sm:$0xff] }
  0x3d   :  { %v1154_v14 = vpack.c.bf16 %v71_v12, %v69_v11  ;;  %v70_v17 = vld [vmem:[#allocation5 + $0x10] sm:$0xff]  ;;  %1165 = vmatpush1.bf16.msra.mxu1 %v1558_v9  ;;  %v1564_v18 = vpack.c.bf16 %v178_v15, %v176_v13  ;;  %v181_v20 = vld [vmem:[#allocation7 + $0x48] sm:$0xff]  ;;  %v183_v21 = vld [vmem:[#allocation7 + $0x58] sm:$0xff]  ;;  %v84_v41 = vsub.s32 1, %v79_v40  ;;  %v80_v51 = vsub.s32 0, %v79_v40 }
  0x3e   :  { %v1156_v19 = vpack.c.bf16 %v70_v17, %v68_v16  ;;  %v73_v22 = vld [vmem:[#allocation5 + $0x28] sm:$0xff]  ;;  %1167 = vmatprep.subr.bf16.mxu1 %v1560_v10  ;;  %v1567_v23 = vpack.c.bf16 %v183_v21, %v181_v20  ;;  %v75_v24 = vld [vmem:[#allocation5 + $0x38] sm:$0xff]  ;;  %v180_v25 = vld [vmem:[#allocation7 + $0x40] sm:$0xff] }
  0x3f   :  { %1155 = vmatprep.subr.bf16.mxu0 %v1154_v14  ;;  %v182_v26 = vld [vmem:[#allocation7 + $0x50] sm:$0xff]  ;;  %v1158_v27 = vpack.c.bf16 %v75_v24, %v73_v22  ;;  %v72_v28 = vld [vmem:[#allocation5 + $0x20] sm:$0xff]  ;;  %v185_v30 = vld [vmem:[#allocation7 + $0x68] sm:$0xff] }
  0x40   :  { %1157 = vmatpush1.bf16.msra.mxu0 %v1156_v19  ;;  %v74_v29 = vld [vmem:[#allocation5 + $0x30] sm:$0xff]  ;;  %v187_v32 = vld [vmem:[#allocation7 + $0x78] sm:$0xff]  ;;  %v1570_v33 = vpack.c.bf16 %v182_v26, %v180_v25  ;;  %v184_v35 = vld [vmem:[#allocation7 + $0x60] sm:$0xff] }
  0x41   :  { %v1160_v31 = vpack.c.bf16 %v74_v29, %v72_v28  ;;  %1169 = vmatpush1.bf16.msra.mxu1 %v1564_v18  ;;  %1159 = vmatprep.subr.bf16.mxu0 %v1158_v27  ;;  %v1573_v34 = vpack.c.bf16 %v187_v32, %v185_v30  ;;  %v186_v36 = vld [vmem:[#allocation7 + $0x70] sm:$0xff]  ;;  %v67_v61 = vld [vmem:[#allocation3 + $0x8] sm:$0xff] }
  0x42   :  { %1171 = vmatprep.subr.bf16.mxu1 %v1567_v23  ;;  %v66_v37 = vld [vmem:[#allocation3] sm:$0xff]  ;;  %v1577_v38 = vpack.c.bf16 %v186_v36, %v184_v35 }
  0x43   :  { %v76_v42 = vld [vmem:[%s1728_s3] sm:$0x3] }
  0x44   :  { %1161 = vmatpush1.bf16.msra.mxu0 %v1160_v31  ;;  %v1605_v44 = vrot.slane %v76_v42, %v84_v41  ;;  %v1612_v52 = vrot.slane %v76_v42, %v80_v51 }
  0x45   :  { %1179 = vmatprep.subr.bf16.mxu0 %v1556_v5  ;;  %1173 = vmatpush1.bf16.msra.mxu1 %v1570_v33 }
  0x46   :  { %1175 = vmatprep.subr.bf16.mxu1 %v1573_v34 }
  0x47   :  { %1127 = vmatmul.mubr.msk.f32.vlgmr.msra.gmra.mrb[0].mxu0 %vm88_vm0, %v66_v37 }
  0x48   :  { %1181 = vmatpush1.bf16.msra.mxu0 %v1558_v9  ;;  %165 = vmatprep.mubr.f32.mxu0 %v1472_v1 }
  0x49   :  { %1183 = vmatprep.subr.bf16.mxu0 %v1560_v10  ;;  %1177 = vmatpush1.bf16.msra.mxu1 %v1577_v38 }
  0x4a   :  { %1195 = vmatprep.subr.bf16.mxu1 %v1556_v5 }
  0x4b   :  { %1128 = vmatmul.mubr.msk.f32.gmra.mrb[2].mxu0 %vm88_vm0, %v67_v61 }
  0x4c   :  { %1185 = vmatpush1.bf16.msra.mxu0 %v1564_v18  ;;  %257 = vmatmul.mubr.f32.vlgmr.msra.gmra.mrb[0].mxu1 %v1472_v1 }
  0x4d   :  { %1187 = vmatprep.subr.bf16.mxu0 %v1567_v23  ;;  %1197 = vmatpush1.bf16.msra.mxu1 %v1558_v9 }
  0x4e   :  { %478 = vmatprep.mubr.f32.mxu1 %v1472_v1  ;;  %1199 = vmatprep.subr.bf16.mxu1 %v1560_v10 }
  0x4f   :  { %362 = vmatprep.mubr.f32.mxu0 %v1472_v1 }
  0x50   :  { %1189 = vmatpush1.bf16.msra.mxu0 %v1570_v33 }
  0x51   :  { %1191 = vmatprep.subr.bf16.mxu0 %v1573_v34  ;;  %1201 = vmatpush1.bf16.msra.mxu1 %v1564_v18 }
  0x52   :  { %1203 = vmatprep.subr.bf16.mxu1 %v1567_v23 }
  0x54   :  { %1193 = vmatpush1.bf16.msra.mxu0 %v1577_v38 }
  0x55   :  { %1211 = vmatprep.subr.bf16.mxu0 %v1556_v5  ;;  %1205 = vmatpush1.bf16.msra.mxu1 %v1570_v33 }
  0x56   :  { %1207 = vmatprep.subr.bf16.mxu1 %v1573_v34 }
  0x59   :  { %1209 = vmatpush1.bf16.msra.mxu1 %v1577_v38 }
  0x5a   :  { %1227 = vmatprep.subr.bf16.mxu1 %v1556_v5 }
 0x11a   :  { %v161_v43 = vpop.f32.mrb[0].mxu0 }
 0x11b   :  { %v163_v45 = vpop.f32.mrb[1].mxu0  ;;  %v1615_v53 = vadd.f32 %v161_v43, %v1612_v52 }
 0x11c   :  { %v1608_v46 = vadd.f32 %v163_v45, %v1605_v44 }
 0x11e   :  { %v1622_v4 = vpop.f32.mrb[2].mxu0 }
 0x11f   :  { %v258_v47 = vpop.f32.mrb[0].mxu1  ;;  %v1624_v6 = vpop.f32.mrb[3].mxu0 }
 0x120   :  { %v260_v48 = vpop.f32.mrb[1].mxu1  ;;  %v263_v54 = vadd.f32 %v258_v47, %v1615_v53 }
 0x121   :  { %v264_v49 = vadd.f32 %v260_v48, %v1608_v46 }
 0x122   :  { %v1129_v55 = vmul.f32 -1.442695, %v263_v54 }
 0x123   :  { %1299 = vtanh.f32 %v264_v49  ;;  %v1130_v3 = vmul.f32 -1.442695, %v264_v49 }
 0x124   :  { %1301 = vpow2.f32 %v1129_v55 }
 0x12d   :  { %v1300_v50 = vpop.eup %1299 }
 0x12e   :  { %280 = vrot.lane.b32.xlu0 %v1300_v50, %s1473_s9  ;;  %v1302_v56 = vpop.eup %1301 }
 0x12f   :  { %v271_v57 = vadd.f32 1.0, %v1302_v56 }
 0x131   :  { %1303 = vrcp.f32 %v271_v57 }
 0x13b   :  { %v1304_v58 = vpop.eup %1303 }
 0x13c   :  { %v278_v62 = vmul.f32 0.0, %v1304_v58 }
 0x1a0   :  { %v281_v59 = vpop.permute.xlu0 %280 }
 0x1a1   :  { %v283_v60 = vmul.f32 %v1304_v58, %v281_v59 }
 0x1a3   :  { %285 = vrot.lane.b32.xlu0 %v283_v60, %s1473_s9 }
 0x215   :  { %v286_v63 = vpop.permute.xlu0 %285 }
 0x216   :  { %v288_v0 = vadd.f32 %v286_v63, %v278_v62 }
 0x218   :  { %1305 = vtanh.f32 %v288_v0  ;;  %v391_v29 = vrot.slane %v288_v0, 6 }
 0x219   :  { %1307 = vpow2.f32 %v1130_v3 }
 0x222   :  { %v1306_v2 = vpop.eup %1305 }
 0x223   :  { %291 = vrot.lane.b32.xlu1 %v1306_v2, %s1473_s9  ;;  %v1308_v7 = vpop.eup %1307 }
 0x224   :  { %v272_v8 = vadd.f32 1.0, %v1308_v7 }
 0x226   :  { %1309 = vrcp.f32 %v272_v8 }
 0x230   :  { %v1310_v11 = vpop.eup %1309 }
 0x295   :  { %v292_v12 = vpop.permute.xlu1 %291 }
 0x296   :  { %v294_v13 = vmul.f32 %v1310_v11, %v292_v12 }
 0x298   :  { %1131 = vmatmul.mubr.msk.f32.vlgmr.msra.gmra.mrb[4].mxu0 %vm188_vm1, %v294_v13 }
 0x299   :  { %1213 = vmatpush1.bf16.msra.mxu0 %v1558_v9  ;;  %594 = vmatprep.mubr.f32.mxu0 %v1472_v1 }
 0x29a   :  { %1215 = vmatprep.subr.bf16.mxu0 %v1560_v10 }
 0x29d   :  { %1217 = vmatpush1.bf16.msra.mxu0 %v1564_v18 }
 0x29e   :  { %1219 = vmatprep.subr.bf16.mxu0 %v1567_v23 }
 0x2a1   :  { %1221 = vmatpush1.bf16.msra.mxu0 %v1570_v33 }
 0x2a2   :  { %1223 = vmatprep.subr.bf16.mxu0 %v1573_v34 }
 0x2a5   :  { %1225 = vmatpush1.bf16.msra.mxu0 %v1577_v38 }
 0x2a6   :  { %1243 = vmatprep.subr.bf16.mxu0 %v1556_v5 }
 0x36b   :  { %v364_v14 = vpop.f32.mrb[4].mxu0 }
 0x36c   :  { %v366_v15 = vpop.f32.mrb[5].mxu0  ;;  %v371_v20 = vrot.slane %v364_v14, 6 }
 0x36d   :  { %v372_v16 = vrot.slane %v366_v15, 6 }
 0x36e   :  { %v375_v21 = vadd.f32 %v371_v20, %v1615_v53 }
 0x36f   :  { %v376_v17 = vadd.f32 %v372_v16, %v1608_v46 }
 0x370   :  { %v1132_v22 = vmul.f32 -1.442695, %v375_v21 }
 0x371   :  { %1311 = vtanh.f32 %v376_v17  ;;  %v1133_v36 = vmul.f32 -1.442695, %v376_v17 }
 0x372   :  { %1313 = vpow2.f32 %v1132_v22 }
 0x37b   :  { %v1312_v19 = vpop.eup %1311 }
 0x37c   :  { %395 = vrot.lane.b32.xlu1 %v1312_v19, %s1473_s9  ;;  %v1314_v24 = vpop.eup %1313 }
 0x37d   :  { %v383_v25 = vadd.f32 1.0, %v1314_v24 }
 0x37f   :  { %1315 = vrcp.f32 %v383_v25 }
 0x389   :  { %v1316_v26 = vpop.eup %1315 }
 0x38a   :  { %v393_v30 = vmul.f32 %v1316_v26, %v391_v29 }
 0x3ee   :  { %v396_v27 = vpop.permute.xlu1 %395 }
 0x3ef   :  { %v398_v28 = vmul.f32 %v1316_v26, %v396_v27 }
 0x3f1   :  { %400 = vrot.lane.b32.xlu0 %v398_v28, %s1473_s9 }
 0x463   :  { %v401_v31 = vpop.permute.xlu0 %400 }
 0x464   :  { %v403_v32 = vadd.f32 %v401_v31, %v393_v30 }
 0x466   :  { %1317 = vtanh.f32 %v403_v32  ;;  %v507_v61 = vrot.slane %v403_v32, 6 }
 0x467   :  { %1319 = vpow2.f32 %v1133_v36 }
 0x470   :  { %v1318_v35 = vpop.eup %1317 }
 0x471   :  { %406 = vrot.lane.b32.xlu1 %v1318_v35, %s1473_s9  ;;  %v1320_v37 = vpop.eup %1319 }
 0x472   :  { %v384_v39 = vadd.f32 1.0, %v1320_v37 }
 0x474   :  { %1321 = vrcp.f32 %v384_v39 }
 0x47e   :  { %v1322_v40 = vpop.eup %1321 }
 0x4e3   :  { %v407_v41 = vpop.permute.xlu1 %406 }
 0x4e4   :  { %v409_v42 = vmul.f32 %v1322_v40, %v407_v41 }
 0x4e6   :  { %v411_v43 = vrot.slane %v409_v42, 2  ;;  %v1682_v42 = vadd.f32 %v1624_v6, %v1605_v44 }
 0x4e8   :  { %1134 = vmatmul.mubr.msk.f32.vlgmr.msra.gmra.mrb[2].mxu1 %vm188_vm1, %v411_v43 }
 0x4e9   :  { %1229 = vmatpush1.bf16.msra.mxu1 %v1558_v9  ;;  %710 = vmatprep.mubr.f32.mxu1 %v1472_v1 }
 0x4ea   :  { %1231 = vmatprep.subr.bf16.mxu1 %v1560_v10 }
 0x4ed   :  { %1233 = vmatpush1.bf16.msra.mxu1 %v1564_v18 }
 0x4ee   :  { %1235 = vmatprep.subr.bf16.mxu1 %v1567_v23 }
 0x4f1   :  { %1237 = vmatpush1.bf16.msra.mxu1 %v1570_v33 }
 0x4f2   :  { %1239 = vmatprep.subr.bf16.mxu1 %v1573_v34 }
 0x4f5   :  { %1241 = vmatpush1.bf16.msra.mxu1 %v1577_v38 }
 0x4f6   :  { %1259 = vmatprep.subr.bf16.mxu1 %v1556_v5 }
 0x5bb   :  { %v480_v45 = vpop.f32.mrb[2].mxu1 }
 0x5bc   :  { %v482_v47 = vpop.f32.mrb[3].mxu1  ;;  %v487_v51 = vrot.slane %v480_v45, 4 }
 0x5bd   :  { %v488_v48 = vrot.slane %v482_v47, 4 }
 0x5be   :  { %v491_v54 = vadd.f32 %v487_v51, %v1615_v53 }
 0x5bf   :  { %v492_v49 = vadd.f32 %v488_v48, %v1608_v46 }
 0x5c0   :  { %v1135_v55 = vmul.f32 -1.442695, %v491_v54 }
 0x5c1   :  { %1323 = vtanh.f32 %v492_v49  ;;  %v1136_v3 = vmul.f32 -1.442695, %v492_v49  ;;  %v1688_v49 = vadd.f32 %v1622_v4, %v1612_v52 }
 0x5c2   :  { %1325 = vpow2.f32 %v1135_v55 }
 0x5cb   :  { %v1324_v50 = vpop.eup %1323 }
 0x5cc   :  { %511 = vrot.lane.b32.xlu0 %v1324_v50, %s1473_s9  ;;  %v1326_v56 = vpop.eup %1325 }
 0x5cd   :  { %v499_v57 = vadd.f32 1.0, %v1326_v56 }
 0x5cf   :  { %1327 = vrcp.f32 %v499_v57 }
 0x5d9   :  { %v1328_v58 = vpop.eup %1327 }
 0x5da   :  { %v509_v62 = vmul.f32 %v1328_v58, %v507_v61 }
 0x63e   :  { %v512_v59 = vpop.permute.xlu0 %511 }
 0x63f   :  { %v514_v60 = vmul.f32 %v1328_v58, %v512_v59 }
 0x641   :  { %516 = vrot.lane.b32.xlu1 %v514_v60, %s1473_s9 }
 0x6b3   :  { %v517_v63 = vpop.permute.xlu1 %516 }
 0x6b4   :  { %v519_v0 = vadd.f32 %v517_v63, %v509_v62 }
 0x6b6   :  { %1329 = vtanh.f32 %v519_v0  ;;  %v623_v29 = vrot.slane %v519_v0, 6 }
 0x6b7   :  { %1331 = vpow2.f32 %v1136_v3 }
 0x6c0   :  { %v1330_v2 = vpop.eup %1329 }
 0x6c1   :  { %522 = vrot.lane.b32.xlu0 %v1330_v2, %s1473_s9  ;;  %v1332_v7 = vpop.eup %1331 }
 0x6c2   :  { %v500_v8 = vadd.f32 1.0, %v1332_v7 }
 0x6c4   :  { %1333 = vrcp.f32 %v500_v8 }
 0x6ce   :  { %v1334_v11 = vpop.eup %1333 }
 0x733   :  { %v523_v12 = vpop.permute.xlu0 %522 }
 0x734   :  { %v525_v13 = vmul.f32 %v1334_v11, %v523_v12 }
 0x736   :  { %v527_v14 = vrot.slane %v525_v13, 4 }
 0x738   :  { %1137 = vmatmul.mubr.msk.f32.vlgmr.msra.gmra.mrb[6].mxu0 %vm188_vm1, %v527_v14 }
 0x739   :  { %1245 = vmatpush1.bf16.msra.mxu0 %v1558_v9  ;;  %819 = vmatprep.mubr.f32.mxu0 %v1472_v1 }
 0x73a   :  { %1247 = vmatprep.subr.bf16.mxu0 %v1560_v10 }
 0x73d   :  { %1249 = vmatpush1.bf16.msra.mxu0 %v1564_v18 }
 0x73e   :  { %1251 = vmatprep.subr.bf16.mxu0 %v1567_v23 }
 0x741   :  { %1253 = vmatpush1.bf16.msra.mxu0 %v1570_v33 }
 0x742   :  { %1255 = vmatprep.subr.bf16.mxu0 %v1573_v34 }
 0x745   :  { %1257 = vmatpush1.bf16.msra.mxu0 %v1577_v38 }
 0x746   :  { %1275 = vmatprep.subr.bf16.mxu0 %v1556_v5 }
 0x80b   :  { %v596_v15 = vpop.f32.mrb[6].mxu0 }
 0x80c   :  { %v598_v16 = vpop.f32.mrb[7].mxu0  ;;  %v603_v21 = vrot.slane %v596_v15, 2 }
 0x80d   :  { %v604_v17 = vrot.slane %v598_v16, 2 }
 0x80e   :  { %v607_v22 = vadd.f32 %v603_v21, %v1615_v53 }
 0x80f   :  { %v608_v19 = vadd.f32 %v604_v17, %v1608_v46 }
 0x810   :  { %v1138_v24 = vmul.f32 -1.442695, %v607_v22 }
 0x811   :  { %1335 = vtanh.f32 %v608_v19  ;;  %v1139_v35 = vmul.f32 -1.442695, %v608_v19 }
 0x812   :  { %1337 = vpow2.f32 %v1138_v24 }
 0x81b   :  { %v1336_v20 = vpop.eup %1335 }
 0x81c   :  { %627 = vrot.lane.b32.xlu1 %v1336_v20, %s1473_s9  ;;  %v1338_v25 = vpop.eup %1337 }
 0x81d   :  { %v615_v26 = vadd.f32 1.0, %v1338_v25 }
 0x81f   :  { %1339 = vrcp.f32 %v615_v26 }
 0x829   :  { %v1340_v27 = vpop.eup %1339 }
 0x82a   :  { %v625_v30 = vmul.f32 %v1340_v27, %v623_v29 }
 0x88e   :  { %v628_v28 = vpop.permute.xlu1 %627 }
 0x88f   :  { %v630_v5 = vmul.f32 %v1340_v27, %v628_v28 }
 0x891   :  { %632 = vrot.lane.b32.xlu0 %v630_v5, %s1473_s9 }
 0x903   :  { %v633_v46 = vpop.permute.xlu0 %632 }
 0x904   :  { %v635_v31 = vadd.f32 %v633_v46, %v625_v30 }
 0x906   :  { %1341 = vtanh.f32 %v635_v31  ;;  %v733_v57 = vrot.slane %v635_v31, 6 }
 0x907   :  { %1343 = vpow2.f32 %v1139_v35 }
 0x910   :  { %v1342_v32 = vpop.eup %1341 }
 0x911   :  { %638 = vrot.lane.b32.xlu1 %v1342_v32, %s1473_s9  ;;  %v1344_v53 = vpop.eup %1343 }
 0x912   :  { %v616_v36 = vadd.f32 1.0, %v1344_v53 }
 0x914   :  { %1345 = vrcp.f32 %v616_v36 }
 0x91e   :  { %v1346_v37 = vpop.eup %1345 }
 0x983   :  { %v639_v39 = vpop.permute.xlu1 %638 }
 0x984   :  { %v641_v40 = vmul.f32 %v1346_v37, %v639_v39 }
 0x986   :  { %v643_v41 = vrot.slane %v641_v40, 6 }
 0x988   :  { %1140 = vmatmul.mubr.msk.f32.vlgmr.msra.gmra.mrb[4].mxu1 %vm188_vm1, %v643_v41 }
 0x989   :  { %1261 = vmatpush1.bf16.msra.mxu1 %v1558_v9  ;;  %935 = vmatprep.mubr.f32.mxu1 %v1472_v1 }
 0x98a   :  { %1263 = vmatprep.subr.bf16.mxu1 %v1560_v10 }
 0x98d   :  { %1265 = vmatpush1.bf16.msra.mxu1 %v1564_v18 }
 0x98e   :  { %1267 = vmatprep.subr.bf16.mxu1 %v1567_v23 }
 0x991   :  { %1269 = vmatpush1.bf16.msra.mxu1 %v1570_v33 }
 0x992   :  { %1271 = vmatprep.subr.bf16.mxu1 %v1573_v34 }
 0x995   :  { %1273 = vmatpush1.bf16.msra.mxu1 %v1577_v38 }
 0xa5b   :  { %v712_v43 = vpop.f32.mrb[4].mxu1 }
 0xa5c   :  { %v714_v45 = vpop.f32.mrb[5].mxu1  ;;  %v717_v50 = vadd.f32 %v712_v43, %v1688_v49 }
 0xa5d   :  { %v718_v47 = vadd.f32 %v714_v45, %v1682_v42 }
 0xa5e   :  { %v1141_v51 = vmul.f32 -1.442695, %v717_v50 }
 0xa5f   :  { %1347 = vtanh.f32 %v718_v47  ;;  %v1142_v52 = vmul.f32 -1.442695, %v718_v47 }
 0xa60   :  { %1349 = vpow2.f32 %v1141_v51 }
 0xa69   :  { %v1348_v48 = vpop.eup %1347 }
 0xa6a   :  { %737 = vrot.lane.b32.xlu0 %v1348_v48, %s1473_s9  ;;  %v1350_v54 = vpop.eup %1349 }
 0xa6b   :  { %v725_v55 = vadd.f32 1.0, %v1350_v54 }
 0xa6d   :  { %1351 = vrcp.f32 %v725_v55 }
 0xa77   :  { %v1352_v44 = vpop.eup %1351 }
 0xa78   :  { %v735_v58 = vmul.f32 %v1352_v44, %v733_v57 }
 0xadc   :  { %v738_v6 = vpop.permute.xlu0 %737 }
 0xadd   :  { %v740_v56 = vmul.f32 %v1352_v44, %v738_v6 }
 0xadf   :  { %742 = vrot.lane.b32.xlu1 %v740_v56, %s1473_s9 }
 0xb51   :  { %v743_v59 = vpop.permute.xlu1 %742 }
 0xb52   :  { %v745_v60 = vadd.f32 %v743_v59, %v735_v58 }
 0xb54   :  { %1353 = vtanh.f32 %v745_v60  ;;  %v848_v13 = vrot.slane %v745_v60, 6 }
 0xb55   :  { %1355 = vpow2.f32 %v1142_v52 }
 0xb5e   :  { %v1354_v61 = vpop.eup %1353 }
 0xb5f   :  { %748 = vrot.lane.b32.xlu0 %v1354_v61, %s1473_s9  ;;  %v1356_v4 = vpop.eup %1355 }
 0xb60   :  { %v726_v62 = vadd.f32 1.0, %v1356_v4 }
 0xb62   :  { %1357 = vrcp.f32 %v726_v62 }
 0xb6c   :  { %v1358_v63 = vpop.eup %1357 }
 0xbd1   :  { %v749_v0 = vpop.permute.xlu0 %748 }
 0xbd2   :  { %v751_v2 = vmul.f32 %v1358_v63, %v749_v0 }
 0xbd4   :  { %1143 = vmatmul.mubr.msk.f32.vlgmr.msra.gmra.mrb[8].mxu0 %vm188_vm1, %v751_v2 }
 0xbd5   :  { %1277 = vmatpush1.bf16.msra.mxu0 %v1558_v9  ;;  %1051 = vmatprep.mubr.f32.mxu0 %v1472_v1 }
 0xbd6   :  { %1279 = vmatprep.subr.bf16.mxu0 %v1560_v10 }
 0xbd9   :  { %1281 = vmatpush1.bf16.msra.mxu0 %v1564_v18 }
 0xbda   :  { %1283 = vmatprep.subr.bf16.mxu0 %v1567_v23 }
 0xbdd   :  { %1285 = vmatpush1.bf16.msra.mxu0 %v1570_v33 }
 0xbde   :  { %1287 = vmatprep.subr.bf16.mxu0 %v1573_v34 }
 0xbe1   :  { %1289 = vmatpush1.bf16.msra.mxu0 %v1577_v38 }
 0xca7   :  { %v821_v3 = vpop.f32.mrb[8].mxu0 }
 0xca8   :  { %v823_v7 = vpop.f32.mrb[9].mxu0  ;;  %v828_v1 = vrot.slane %v821_v3, 6 }
 0xca9   :  { %v829_v8 = vrot.slane %v823_v7, 6 }
 0xcaa   :  { %v832_v10 = vadd.f32 %v828_v1, %v1688_v49 }
 0xcab   :  { %v833_v11 = vadd.f32 %v829_v8, %v1682_v42 }
 0xcac   :  { %v1144_v18 = vmul.f32 -1.442695, %v832_v10 }
 0xcad   :  { %1359 = vtanh.f32 %v833_v11  ;;  %v1145_v19 = vmul.f32 -1.442695, %v833_v11 }
 0xcae   :  { %1361 = vpow2.f32 %v1144_v18 }
 0xcb7   :  { %v1360_v9 = vpop.eup %1359 }
 0xcb8   :  { %852 = vrot.lane.b32.xlu1 %v1360_v9, %s1473_s9  ;;  %v1362_v23 = vpop.eup %1361 }
 0xcb9   :  { %v840_v33 = vadd.f32 1.0, %v1362_v23 }
 0xcbb   :  { %1363 = vrcp.f32 %v840_v33  ;;  %v1152_v33 = vld [vmem:[%s1729_s4] ss:$0 sm:$0xff] }
 0xcc5   :  { %v1364_v34 = vpop.eup %1363 }
 0xcc6   :  { %v850_v14 = vmul.f32 %v1364_v34, %v848_v13  ;;  %v1153_v13 = vld [vmem:[#allocation2] ss:$0 sm:$0xff] }
 0xd2a   :  { %v853_v12 = vpop.permute.xlu1 %852 }
 0xd2b   :  { %v855_v38 = vmul.f32 %v1364_v34, %v853_v12 }
 0xd2d   :  { %857 = vrot.lane.b32.xlu0 %v855_v38, %s1473_s9 }
 0xd9f   :  { %v858_v15 = vpop.permute.xlu0 %857 }
 0xda0   :  { %v860_v16 = vadd.f32 %v858_v15, %v850_v14 }
 0xda2   :  { %1365 = vtanh.f32 %v860_v16  ;;  %v964_v40 = vrot.slane %v860_v16, 6 }
 0xda3   :  { %1367 = vpow2.f32 %v1145_v19 }
 0xdac   :  { %v1366_v17 = vpop.eup %1365 }
 0xdad   :  { %863 = vrot.lane.b32.xlu1 %v1366_v17, %s1473_s9  ;;  %v1368_v20 = vpop.eup %1367 }
 0xdae   :  { %v841_v21 = vadd.f32 1.0, %v1368_v20 }
 0xdb0   :  { %1369 = vrcp.f32 %v841_v21 }
 0xdba   :  { %v1370_v22 = vpop.eup %1369 }
 0xe1f   :  { %v864_v24 = vpop.permute.xlu1 %863 }
 0xe20   :  { %v866_v25 = vmul.f32 %v1370_v22, %v864_v24 }
 0xe22   :  { %v868_v26 = vrot.slane %v866_v25, 2 }
 0xe24   :  { %1146 = vmatmul.mubr.msk.f32.vlgmr.msra.gmra.mrb[6].mxu1 %vm188_vm1, %v868_v26 }
 0xef7   :  { %v937_v27 = vpop.f32.mrb[6].mxu1 }
 0xef8   :  { %v939_v28 = vpop.f32.mrb[7].mxu1  ;;  %v944_v46 = vrot.slane %v937_v27, 4 }
 0xef9   :  { %v945_v5 = vrot.slane %v939_v28, 4 }
 0xefa   :  { %v948_v31 = vadd.f32 %v944_v46, %v1688_v49 }
 0xefb   :  { %v949_v29 = vadd.f32 %v945_v5, %v1682_v42 }
 0xefc   :  { %v1147_v32 = vmul.f32 -1.442695, %v948_v31 }
 0xefd   :  { %1371 = vtanh.f32 %v949_v29  ;;  %v1148_v48 = vmul.f32 -1.442695, %v949_v29 }
 0xefe   :  { %1373 = vpow2.f32 %v1147_v32 }
 0xf07   :  { %v1372_v30 = vpop.eup %1371 }
 0xf08   :  { %968 = vrot.lane.b32.xlu0 %v1372_v30, %s1473_s9  ;;  %v1374_v35 = vpop.eup %1373 }
 0xf09   :  { %v956_v53 = vadd.f32 1.0, %v1374_v35 }
 0xf0b   :  { %1375 = vrcp.f32 %v956_v53 }
 0xf15   :  { %v1376_v36 = vpop.eup %1375 }
 0xf16   :  { %v966_v41 = vmul.f32 %v1376_v36, %v964_v40 }
 0xf7a   :  { %v969_v37 = vpop.permute.xlu0 %968 }
 0xf7b   :  { %v971_v39 = vmul.f32 %v1376_v36, %v969_v37 }
 0xf7d   :  { %973 = vrot.lane.b32.xlu1 %v971_v39, %s1473_s9 }
 0xfef   :  { %v974_v43 = vpop.permute.xlu1 %973 }
 0xff0   :  { %v976_v45 = vadd.f32 %v974_v43, %v966_v41 }
 0xff2   :  { %1377 = vtanh.f32 %v976_v45  ;;  %v1080_v7 = vrot.slane %v976_v45, 6 }
 0xff3   :  { %1379 = vpow2.f32 %v1148_v48 }
 0xffc   :  { %v1378_v47 = vpop.eup %1377 }
 0xffd   :  { %979 = vrot.lane.b32.xlu0 %v1378_v47, %s1473_s9  ;;  %v1380_v50 = vpop.eup %1379 }
 0xffe   :  { %v957_v51 = vadd.f32 1.0, %v1380_v50 }
0x1000   :  { %1381 = vrcp.f32 %v957_v51 }
0x100a   :  { %v1382_v54 = vpop.eup %1381 }
0x106f   :  { %v980_v55 = vpop.permute.xlu0 %979 }
0x1070   :  { %v982_v44 = vmul.f32 %v1382_v54, %v980_v55 }
0x1072   :  { %v984_v6 = vrot.slane %v982_v44, 4 }
0x1074   :  { %1149 = vmatmul.mubr.msk.f32.vlgmr.msra.gmra.mrb[10].mxu0 %vm188_vm1, %v984_v6 }
0x1147   :  { %v1053_v56 = vpop.f32.mrb[10].mxu0 }
0x1148   :  { %v1055_v57 = vpop.f32.mrb[11].mxu0  ;;  %v1060_v61 = vrot.slane %v1053_v56, 2 }
0x1149   :  { %v1061_v58 = vrot.slane %v1055_v57, 2 }
0x114a   :  { %v1064_v52 = vadd.f32 %v1060_v61, %v1688_v49 }
0x114b   :  { %v1065_v59 = vadd.f32 %v1061_v58, %v1682_v42 }
0x114c   :  { %v1150_v4 = vmul.f32 -1.442695, %v1064_v52 }
0x114d   :  { %1383 = vtanh.f32 %v1065_v59  ;;  %v1151_v1 = vmul.f32 -1.442695, %v1065_v59 }
0x114e   :  { %1385 = vpow2.f32 %v1150_v4 }
0x1157   :  { %v1384_v60 = vpop.eup %1383 }
0x1158   :  { %1084 = vrot.lane.b32.xlu1 %v1384_v60, %s1473_s9  ;;  %v1386_v62 = vpop.eup %1385 }
0x1159   :  { %v1072_v63 = vadd.f32 1.0, %v1386_v62 }
0x115b   :  { %1387 = vrcp.f32 %v1072_v63 }
0x1165   :  { %v1388_v0 = vpop.eup %1387 }
0x1166   :  { %v1082_v8 = vmul.f32 %v1388_v0, %v1080_v7 }
0x11ca   :  { %v1085_v2 = vpop.permute.xlu1 %1084 }
0x11cb   :  { %v1087_v3 = vmul.f32 %v1388_v0, %v1085_v2 }
0x11cd   :  { %1089 = vrot.lane.b32.xlu0 %v1087_v3, %s1473_s9 }
0x123f   :  { %v1090_v42 = vpop.permute.xlu0 %1089 }
0x1240   :  { %v1092_v11 = vadd.f32 %v1090_v42, %v1082_v8 }
0x1242   :  { %1389 = vtanh.f32 %v1092_v11 }
0x1243   :  { %1391 = vpow2.f32 %v1151_v1 }
0x124c   :  { %v1390_v9 = vpop.eup %1389 }
0x124d   :  { %1095 = vrot.lane.b32.xlu1 %v1390_v9, %s1473_s9  ;;  %v1392_v49 = vpop.eup %1391 }
0x124e   :  { %v1073_v10 = vadd.f32 1.0, %v1392_v49 }
0x1250   :  { %1393 = vrcp.f32 %v1073_v10 }
0x125a   :  { %v1394_v18 = vpop.eup %1393 }
0x12bf   :  { %v1096_v23 = vpop.permute.xlu1 %1095 }
0x12c0   :  { %v1098_v34 = vmul.f32 %v1394_v18, %v1096_v23 }
0x12c2   :  { %v1106_v12 = vmul.f32 %v1152_v33, %v1098_v34 }
0x12c4   :  { %v1108_v38 = vsel %vm1107_vm2, %v1106_v12, 0.0 }
0x12c5   :  { %1109 = vadd.xlane.f32.xlu0 %v1108_v38 }
0x1352   :  { %v1110_v14 = vpop.xlane.xlu0 %1109 }
0x1353   :  { %v1118_v15 = vadd.f32 %v1153_v13, %v1110_v14 }
0x1355   :  { %1120 = vst.msk [vmem:[%s1731_s6 - $0x6] sm:$0xc0] %vm1119_vm3, %v1118_v15 }
0x1356   :  { %1125 = vsyncpa [#allocation4], 1 }
0x1357   :  { %1126 = vsyncpa [#allocation6], 1 }

</bundles_post_ra>
